<compile_context>
chip_gen: v7x
topology: tpu7x:2x2x1
jax: 0.10.0
libtpu: 0.0.40
codegen_flags: <defaults>
</compile_context>

<pallas_src>
from functools import lru_cache

import numpy as np
import jax
import jax.numpy as jnp
from jax import lax
from jax.experimental import pallas as pl
from jax.experimental.pallas import tpu as pltpu


# ----------------------------------------------------------------------------
# host-side parameter sampling (deterministic via seeded numpy RNG)
# ----------------------------------------------------------------------------
def rand_bbox(image_shape, lam, rng, margin=0.0, count=None):
    ratio = np.sqrt(1 - lam)
    img_h, img_w = image_shape[-2:]
    cut_h, cut_w = (int(img_h * ratio), int(img_w * ratio))
    margin_y, margin_x = (int(margin * cut_h), int(margin * cut_w))
    cy = rng.randint(0 + margin_y, img_h - margin_y, size=count)
    cx = rng.randint(0 + margin_x, img_w - margin_x, size=count)
    yl = np.clip(cy - cut_h // 2, 0, img_h)
    yh = np.clip(cy + cut_h // 2, 0, img_h)
    xl = np.clip(cx - cut_w // 2, 0, img_w)
    xh = np.clip(cx + cut_w // 2, 0, img_w)
    return (yl, yh, xl, xh)


def rand_bbox_minmax(image_shape, minmax, rng, count=None):
    assert len(minmax) == 2
    img_h, img_w = image_shape[-2:]
    cut_h = rng.randint(int(img_h * minmax[0]), int(img_h * minmax[1]), size=count)
    cut_w = rng.randint(int(img_w * minmax[0]), int(img_w * minmax[1]), size=count)
    yl = rng.randint(0, img_h - cut_h, size=count)
    xl = rng.randint(0, img_w - cut_w, size=count)
    yu = yl + cut_h
    xu = xl + cut_w
    return (yl, yu, xl, xu)


def cutmix_bbox_and_lam(image_shape, lam, rng, ratio_minmax=None, correct_lam=True,
                        count=None):
    if ratio_minmax is not None:
        yl, yu, xl, xu = rand_bbox_minmax(image_shape, ratio_minmax, rng, count=count)
    else:
        yl, yu, xl, xu = rand_bbox(image_shape, lam, rng, count=count)
    if correct_lam or ratio_minmax is not None:
        bbox_area = (yu - yl) * (xu - xl)
        lam = 1.0 - bbox_area / float(image_shape[-2] * image_shape[-1])
    return ((yl, yu, xl, xu), lam)


# ----------------------------------------------------------------------------
# tile selection helpers (host-side, static)
# ----------------------------------------------------------------------------
_BLOCK_BUDGET_BYTES = 2 * 1024 * 1024   # conservative per-block budget: fits the
                                        # 16 MiB default scoped VMEM on v5e with
                                        # double-buffered in + out, and is well
                                        # inside v7x's 64 MiB physical VMEM.
                                        # TODO(synk): bump to ~4 MiB on v6e via a
                                        # generation-aware query (1-3% win).
_MIN_GRID_STEPS = 4                     # keep the pipeline deep enough that the
                                        # input DMA / compute / output DMA overlap.
_PAIR_LOOP_MAX_B = 8                    # below this the whole batch fits inside
                                        # one f32 sublane group: use the exact
                                        # unrolled pair loop.


def _round_up(x, m):
    return (x + m - 1) // m * m


def _pick_tile_n(N, B, itemsize, budget=_BLOCK_BUDGET_BYTES,
                 min_steps=_MIN_GRID_STEPS):
    """Largest lane-dense (multiple-of-128) tile along the flattened C*H*W axis
    that keeps one (B, tile) block under the byte budget, while preserving a
    minimum grid depth for pipeline overlap.  Non-dividing N is handled with a
    ragged (masked) last grid block."""
    n_pad = _round_up(N, 128)
    tile = max(128, (budget // max(B * itemsize, 1)) // 128 * 128)
    if n_pad >= min_steps * 128:
        tile = min(tile, max(128, (n_pad // min_steps) // 128 * 128))
    return int(min(tile, n_pad))


# ----------------------------------------------------------------------------
# in-kernel helpers
# ----------------------------------------------------------------------------
def _flip_rows(x):
    """Reverse the rows (batch dim) of a 2-D block, whole-block.

    jnp.flip / lax.rev has no guaranteed Pallas-TPU lowering, so the reversal
    is expressed as an anti-identity matmul on the (otherwise idle in this
    memory-bound kernel) MXU: out[i] = sum_k P[i,k] * x[k], P[i,k] = (i+k==B-1).
    Every product is value*1 or value*0, so bf16 inputs are reversed exactly;
    f32 inputs use the classic 3-way bf16 split (error <= ~1 ulp f32).
    Returns float32.
    """
    B = x.shape[0]
    r = lax.broadcasted_iota(jnp.int32, (B, B), 0)
    c = lax.broadcasted_iota(jnp.int32, (B, B), 1)
    perm = jnp.where(r + c == B - 1, 1.0, 0.0).astype(jnp.bfloat16)
    if x.dtype == jnp.bfloat16:
        return jnp.dot(perm, x, preferred_element_type=jnp.float32)
    xf32 = x.astype(jnp.float32)
    hi = xf32.astype(jnp.bfloat16)
    r1 = xf32 - hi.astype(jnp.float32)
    mid = r1.astype(jnp.bfloat16)
    lo = (r1 - mid.astype(jnp.float32)).astype(jnp.bfloat16)
    out = jnp.dot(perm, hi, preferred_element_type=jnp.float32)
    out = out + jnp.dot(perm, mid, preferred_element_type=jnp.float32)
    out = out + jnp.dot(perm, lo, preferred_element_type=jnp.float32)
    return out


# ----------------------------------------------------------------------------
# Pallas kernels (specialized at trace time on use_cutmix)
# ----------------------------------------------------------------------------
@lru_cache(maxsize=None)
def _build_mixup_fn(B, C, H, W, dtype_name):
    """Classic mixup:  out[b] = lam*x[b] + (1-lam)*x[B-1-b].

    x is viewed as (B, C*H*W); the grid runs over lane-dense feature tiles and
    every block holds the FULL batch, so each input byte is read exactly once
    and each output byte written exactly once (HBM traffic = 2 * B*C*H*W).
    """
    dtype = jnp.dtype(dtype_name)
    N = C * H * W
    tile_n = _pick_tile_n(N, B, dtype.itemsize)
    grid_n = pl.cdiv(N, tile_n)

    def kernel(lam_ref, x_ref, o_ref):
        lam = lam_ref[0]                      # f32 scalar (SMEM)
        oml = 1.0 - lam
        if B < _PAIR_LOOP_MAX_B:
            # Tiny batch: short exact pair loop (no vreg density to be gained,
            # the whole batch fits inside one sublane group anyway).
            for i in range(B // 2):
                j = B - 1 - i
                xi = x_ref[pl.ds(i, 1), :].astype(jnp.float32)
                xj = x_ref[pl.ds(j, 1), :].astype(jnp.float32)
                o_ref[pl.ds(i, 1), :] = (xi * lam + xj * oml).astype(o_ref.dtype)
                o_ref[pl.ds(j, 1), :] = (xj * lam + xi * oml).astype(o_ref.dtype)
            if B % 2 == 1:                    # middle sample mixes with itself
                m = B // 2
                xm = x_ref[pl.ds(m, 1), :].astype(jnp.float32)
                o_ref[pl.ds(m, 1), :] = (xm * lam + xm * oml).astype(o_ref.dtype)
        else:
            # Whole-block: full-width vreg loads/stores, f32 blend, batch
            # reversal on the idle MXU (odd B: middle row maps to itself).
            xraw = x_ref[...]
            xb = xraw.astype(jnp.float32)
            xf = _flip_rows(xraw)
            o_ref[...] = (xb * lam + xf * oml).astype(o_ref.dtype)

    pallas_fn = pl.pallas_call(
        kernel,
        out_shape=jax.ShapeDtypeStruct((B, N), dtype),
        grid_spec=pltpu.PrefetchScalarGridSpec(
            num_scalar_prefetch=1,            # lam (f32 SMEM scalar)
            grid=(grid_n,),
            in_specs=[pl.BlockSpec((B, tile_n), lambda t, lam: (0, t))],
            out_specs=pl.BlockSpec((B, tile_n), lambda t, lam: (0, t)),
        ),
        compiler_params=pltpu.CompilerParams(
            # TODO(synk): on v7x, CORE_PARALLEL on this axis would shard the
            # streaming loop across both TensorCores.
            dimension_semantics=("parallel",)),
    )

    def run(lam_arr, x):
        out = pallas_fn(lam_arr, x.reshape(B, N))
        return out.reshape(B, C, H, W)

    return jax.jit(run)


@lru_cache(maxsize=None)
def _build_cutmix_fn(B, C, H, W, dtype_name):
    """CutMix: out[b, :, yl:yh, xl:xh] = x[B-1-b, ...], rest copied.

    Same lane-dense flattened (B, C*H*W) layout as mixup.  The bbox mask is
    built once on the host as a tiny (1, C*H*W) f32 array (kernel needs no
    per-element div/mod index math); its HBM traffic is 1/(2B) of the images.
    """
    dtype = jnp.dtype(dtype_name)
    N = C * H * W
    tile_n = _pick_tile_n(N, B, dtype.itemsize)
    grid_n = pl.cdiv(N, tile_n)

    def kernel(x_ref, m_ref, o_ref):
        if B < _PAIR_LOOP_MAX_B:
            inside = m_ref[...] != 0.0                      # (1, T)
            for i in range(B // 2):
                j = B - 1 - i
                xi = x_ref[pl.ds(i, 1), :]
                xj = x_ref[pl.ds(j, 1), :]
                o_ref[pl.ds(i, 1), :] = jnp.where(inside, xj, xi)
                o_ref[pl.ds(j, 1), :] = jnp.where(inside, xi, xj)
            if B % 2 == 1:                                  # middle: self-paste
                m = B // 2
                o_ref[pl.ds(m, 1), :] = x_ref[pl.ds(m, 1), :]
        else:
            xb = x_ref[...]                                 # (B, T)
            xf = _flip_rows(xb).astype(xb.dtype)
            # mask broadcast hoisted and done once per block
            m_b = jnp.broadcast_to(m_ref[...], xb.shape)
            o_ref[...] = jnp.where(m_b != 0.0, xf, xb)

    pallas_fn = pl.pallas_call(
        kernel,
        out_shape=jax.ShapeDtypeStruct((B, N), dtype),
        grid=(grid_n,),
        in_specs=[pl.BlockSpec((B, tile_n), lambda t: (0, t)),
                  pl.BlockSpec((1, tile_n), lambda t: (0, t))],
        out_specs=pl.BlockSpec((B, tile_n), lambda t: (0, t)),
        compiler_params=pltpu.CompilerParams(
            dimension_semantics=("parallel",)),
    )

    def run(bbox_arr, x):
        yl, yh, xl, xh = bbox_arr[0], bbox_arr[1], bbox_arr[2], bbox_arr[3]
        rows = lax.broadcasted_iota(jnp.int32, (H, W), 0)
        cols = lax.broadcasted_iota(jnp.int32, (H, W), 1)
        inside = (rows >= yl) & (rows < yh) & (cols >= xl) & (cols < xh)
        mask = jnp.broadcast_to(inside[None], (C, H, W)).reshape(1, N)
        mask = mask.astype(jnp.float32)
        # TODO(synk): remaining traffic-level win — alias x to the output
        # (input_output_aliases) and only rewrite tiles intersecting [yl, yh),
        # cutting HBM traffic by roughly sqrt(1 - lam).
        out = pallas_fn(x.reshape(B, N), mask)
        return out.reshape(B, C, H, W)

    return jax.jit(run)


def mix_batch_pallas(x, lam, use_cutmix, bbox):
    """x: [B, C, H, W] float array.  Returns the mixed batch (same shape/dtype).

    Note: integer image dtypes would be truncated by the blend; float only.
    """
    B, C, H, W = x.shape
    dtype_name = jnp.dtype(x.dtype).name
    if use_cutmix:
        fn = _build_cutmix_fn(B, C, H, W, dtype_name)
        bbox_arr = jnp.asarray([int(bbox[0]), int(bbox[1]),
                                int(bbox[2]), int(bbox[3])], dtype=jnp.int32)
        return fn(bbox_arr, x)
    fn = _build_mixup_fn(B, C, H, W, dtype_name)
    lam_arr = jnp.asarray([float(lam)], dtype=jnp.float32)
    return fn(lam_arr, x)


# ----------------------------------------------------------------------------
# Mixup module (JAX / Pallas version of storch.transforms.timm_mixup.Mixup)
# ----------------------------------------------------------------------------
class Mixup:
    def __init__(self, mixup_alpha=1.0, cutmix_alpha=0.0, cutmix_minmax=None,
                 prob=1.0, switch_prob=0.5, mode='batch', correct_lambda=True,
                 seed=0):
        self.mixup_alpha = mixup_alpha
        self.cutmix_alpha = cutmix_alpha
        self.cutmix_minmax = cutmix_minmax
        if self.cutmix_minmax is not None:
            assert len(self.cutmix_minmax) == 2
            self.cutmix_alpha = 1.0
        self.mix_prob = prob
        self.switch_prob = switch_prob
        self.mode = mode
        self.correct_lambda = correct_lambda
        self.enabled = True
        self.rng = np.random.RandomState(seed)
        self._last_bbox = None   # kept for testing / inspection

    def _params_per_batch(self):
        lam = 1.0
        use_cutmix = False
        if self.enabled and self.rng.rand() < self.mix_prob:
            if self.mixup_alpha > 0.0 and self.cutmix_alpha > 0.0:
                use_cutmix = self.rng.rand() < self.switch_prob
                lam_mixed = (self.rng.beta(self.cutmix_alpha, self.cutmix_alpha)
                             if use_cutmix else
                             self.rng.beta(self.mixup_alpha, self.mixup_alpha))
            elif self.mixup_alpha > 0.0:
                lam_mixed = self.rng.beta(self.mixup_alpha, self.mixup_alpha)
            elif self.cutmix_alpha > 0.0:
                use_cutmix = True
                lam_mixed = self.rng.beta(self.cutmix_alpha, self.cutmix_alpha)
            else:
                lam_mixed = 1.0
            lam = float(lam_mixed)
        return lam, use_cutmix

    def _mix_batch(self, x):
        lam, use_cutmix = self._params_per_batch()
        self._last_bbox = None
        if lam == 1.0:
            return x, 1.0
        bbox = (0, 0, 0, 0)
        if use_cutmix:
            bbox, lam = cutmix_bbox_and_lam(
                x.shape, lam, self.rng, ratio_minmax=self.cutmix_minmax,
                correct_lam=self.correct_lambda)
            self._last_bbox = tuple(int(v) for v in bbox)
        x_out = mix_batch_pallas(x, lam, use_cutmix, bbox)
        return x_out, float(lam)

    def __call__(self, x):
        if self.mode == 'batch':
            x, lambdas = self._mix_batch(x)
        elif self.mode == 'element':
            # TODO(synk): element-wise mode (per-sample lam/bbox) not implemented;
            # batch mode (the default) is covered by the Pallas kernels.
            raise NotImplementedError("element mode not implemented")
        return x, lambdas


# ----------------------------------------------------------------------------
if __name__ == "__main__":
    key = jax.random.PRNGKey(0)
    k1, k2 = jax.random.split(key)

    # ---- B = 2 (< 8): exact unrolled-pair kernel path ----
    x_small = jax.random.normal(k1, (2, 4, 16, 16), dtype=jnp.float32)

    lam = 0.7
    out = jax.block_until_ready(mix_batch_pallas(x_small, lam, False, (0, 0, 0, 0)))
    ref = np.asarray(x_small) * lam + np.asarray(x_small)[::-1] * (1.0 - lam)
    assert np.allclose(np.asarray(out), ref, atol=1e-5), "mixup (B=2) mismatch"

    bbox = (3, 11, 2, 9)
    out = jax.block_until_ready(mix_batch_pallas(x_small, 0.5, True, bbox))
    ref = np.asarray(x_small).copy()
    xf = ref[::-1].copy()
    yl, yh, xl, xh = bbox
    ref[:, :, yl:yh, xl:xh] = xf[:, :, yl:yh, xl:xh]
    assert np.allclose(np.asarray(out), ref, atol=1e-6), "cutmix (B=2) mismatch"

    # ---- B = 16 (>= 8): whole-block MXU-permutation kernel path ----
    x_big = jax.random.normal(k2, (16, 4, 16, 16), dtype=jnp.float32)

    lam = 0.3
    out = jax.block_until_ready(mix_batch_pallas(x_big, lam, False, (0, 0, 0, 0)))
    ref = np.asarray(x_big) * lam + np.asarray(x_big)[::-1] * (1.0 - lam)
    assert np.allclose(np.asarray(out), ref, atol=1e-5), "mixup (B=16) mismatch"

    bbox = (4, 13, 5, 15)
    out = jax.block_until_ready(mix_batch_pallas(x_big, 0.5, True, bbox))
    ref = np.asarray(x_big).copy()
    xf = ref[::-1].copy()
    yl, yh, xl, xh = bbox
    ref[:, :, yl:yh, xl:xh] = xf[:, :, yl:yh, xl:xh]
    assert np.allclose(np.asarray(out), ref, atol=1e-5), "cutmix (B=16) mismatch"

    # ---- end-to-end module smoke tests (host RNG parameter sampling) ----
    m1 = Mixup(mixup_alpha=1.0, cutmix_alpha=0.0, mode='batch', seed=0)
    out1, lam1 = m1(x_small)
    out1 = jax.block_until_ready(out1)
    ref1 = np.asarray(x_small) * lam1 + np.asarray(x_small)[::-1] * (1.0 - lam1)
    assert np.allclose(np.asarray(out1), ref1, atol=1e-5), "module mixup mismatch"

    m2 = Mixup(mixup_alpha=0.0, cutmix_alpha=1.0, mode='batch', seed=1)
    out2, lam2 = m2(x_small)
    out2 = jax.block_until_ready(out2)
    ref2 = np.asarray(x_small).copy()
    if m2._last_bbox is not None:
        yl, yh, xl, xh = m2._last_bbox
        xf2 = ref2[::-1].copy()
        ref2[:, :, yl:yh, xl:xh] = xf2[:, :, yl:yh, xl:xh]
    assert np.allclose(np.asarray(out2), ref2, atol=1e-6), "module cutmix mismatch"

    print("KERNEL_OK")
</pallas_src>

<mosaic_0001>
module attributes {stable_mosaic.version = 11 : i64} {
  func.func @kernel(%arg0: i32, %arg1: memref<1xf32, #tpu.memory_space<smem>>, %arg2: memref<2x256xf32, #tpu.memory_space<vmem>>, %arg3: memref<2x256xf32, #tpu.memory_space<vmem>>) attributes {dimension_semantics = [#tpu.dimension_semantics<parallel>], iteration_bounds = array<i64: 4>, scalar_prefetch = 1 : i64, scratch_operands = 0 : i64, tpu.core_type = #tpu.core_type<tc>, window_params = [{transform_indices = @transform_0, window_bounds = array<i64: 2, 256>}, {transform_indices = @transform_1, window_bounds = array<i64: 2, 256>}]} {
    %c0 = arith.constant 0 : index
    %0 = memref.load %arg1[%c0] : memref<1xf32, #tpu.memory_space<smem>>
    %cst = arith.constant 1.000000e+00 : f32
    %1 = arith.subf %cst, %0 : f32
    %c0_0 = arith.constant 0 : index
    %c0_1 = arith.constant 0 : index
    %2 = vector.load %arg2[%c0_0, %c0_1] : memref<2x256xf32, #tpu.memory_space<vmem>>, vector<1x256xf32>
    %c1 = arith.constant 1 : index
    %c0_2 = arith.constant 0 : index
    %3 = vector.load %arg2[%c1, %c0_2] : memref<2x256xf32, #tpu.memory_space<vmem>>, vector<1x256xf32>
    %4 = vector.broadcast %0 : f32 to vector<1x256xf32>
    %5 = arith.mulf %2, %4 : vector<1x256xf32>
    %6 = vector.broadcast %1 : f32 to vector<1x256xf32>
    %7 = arith.mulf %3, %6 : vector<1x256xf32>
    %8 = arith.addf %5, %7 : vector<1x256xf32>
    %c0_3 = arith.constant 0 : index
    %c0_4 = arith.constant 0 : index
    %9 = vector.load %arg3[%c0_3, %c0_4] : memref<2x256xf32, #tpu.memory_space<vmem>>, vector<1x256xf32>
    tpu.vector_store %arg3[%c0_3, %c0_4], %8 {strides = array<i32>} : memref<2x256xf32, #tpu.memory_space<vmem>>, vector<1x256xf32>,
    %10 = vector.broadcast %0 : f32 to vector<1x256xf32>
    %11 = arith.mulf %3, %10 : vector<1x256xf32>
    %12 = vector.broadcast %1 : f32 to vector<1x256xf32>
    %13 = arith.mulf %2, %12 : vector<1x256xf32>
    %14 = arith.addf %11, %13 : vector<1x256xf32>
    %c1_5 = arith.constant 1 : index
    %c0_6 = arith.constant 0 : index
    %15 = vector.load %arg3[%c1_5, %c0_6] : memref<2x256xf32, #tpu.memory_space<vmem>>, vector<1x256xf32>
    tpu.vector_store %arg3[%c1_5, %c0_6], %14 {strides = array<i32>} : memref<2x256xf32, #tpu.memory_space<vmem>>, vector<1x256xf32>,
    return
  }
  func.func @transform_0(%arg0: i32, %arg1: memref<1xf32, #tpu.memory_space<smem>>) -> (i32, i32) {
    %c0_i32 = arith.constant 0 : i32
    %c0_i32_0 = arith.constant 0 : i32
    return %c0_i32, %arg0 : i32, i32
  }
  func.func @transform_1(%arg0: i32, %arg1: memref<1xf32, #tpu.memory_space<smem>>) -> (i32, i32) {
    %c0_i32 = arith.constant 0 : i32
    %c0_i32_0 = arith.constant 0 : i32
    return %c0_i32, %arg0 : i32, i32
  }
}

</mosaic_0001>

<bundles_post_ra>
// kernel: run.1
= control target key start
LH: loop header
LB: loop body
LE: loop exit
PB: predicated region body
PF: predicated region fallthrough
CT: control target
= control target key end

     0   :  { %s245_s11 = smov 0   ;;  %s262_s0 = inlined_call_operand.<no memory space> [shape: f32[1], index: 0, kind: input, shape index: {}]   ;;  %s263_s1 = inlined_call_operand.vmem [shape: f32[2,1024], index: 1, kind: input, shape index: {}]   ;;  %s264_s2 = inlined_call_operand.vmem [shape: f32[2,1024], index: 2, kind: output, shape index: {}]  }
   0x1   :  { %7 = sst [smem:[#allocation3]] %s262_s0 }
   0x2 LB: > { %s198_s12 = sadd.s32 4294967295, %s225_s11   ;;  %p202_p0 = scmp.ge.s32.totalorder %s225_s11, 1  ;;  %s225_s11 = sphi %s245_s11, %s13_s11  }
   0x3   : > { %p90_p1 = scmp.lt.s32.totalorder %s225_s11, 5 }
   0x5   : > { %p91_p2 = pnand %p202_p0, %p90_p1 }
   0x6   : > { %s203_s13 = sshll.u32 (!%p91_p2), %s198_s12, 1  ;;  %s122_s14 = sld [smem:[#allocation3]] (!%p91_p2)  ;;  %v132_v2 = vlaneseq (!%p91_p2) }
   0x7   : > { %94 = sbr.rel (%p91_p2) target bundleno = 23 (0x17), region = 24  ;;  %p111_p3 = scmp.lt.s32.totalorder (!%p91_p2), %s203_s13, 7 }
   0x8   : > { %vm134_vm0 = vcmp.lt.s32.totalorder (!%p91_p2), %v132_v2, 256 }
   0xc   : > { %v127_v0 = vstv (!%p91_p2), %s122_s14  ;;  %s123_s18 = ssub.f32 (!%p91_p2), 1.0, %s122_s14 }
   0xe   : > { %s266_s13 = smov (!%p111_p3, %s203_s13), 7  ;;  %v129_v5 = vstv %s123_s18 }
   0xf   : > { %s204_s0 = sshll.u32 %s266_s13, 1 }
  0x10   : > { %s114_s17 = scalar_lea.vmem %s263_s1, %s204_s0  ;;  %s120_s21 = scalar_lea.vmem %s264_s2, %s204_s0 }
  0x11   : > { %v124_v1 = vld [vmem:[%s114_s17] ss:$2 sm:$0x3]  ;;  %v207_v3 = vld [vmem:[%s114_s17 + $0x1] ss:$2 sm:$0x3] }
  0x12   : > { %v128_v4 = vmul.f32 %v127_v0, %v124_v1  ;;  %v137_v6 = vmul.f32 %v207_v3, %v127_v0  ;;  %v130_v7 = vmul.f32 %v207_v3, %v129_v5  ;;  %v138_v8 = vmul.f32 %v129_v5, %v124_v1 }
  0x14   : > { %v131_v9 = vadd.f32 %v130_v7, %v128_v4  ;;  %v139_v10 = vadd.f32 %v138_v8, %v137_v6 }
  0x16   : > { %136 = vst.msk [vmem:[%s120_s21] ss:$2 sm:$0x3] %vm134_vm0, %v131_v9  ;;  %208 = vst.msk [vmem:[%s120_s21 + $0x1] ss:$2 sm:$0x3] %vm134_vm0, %v139_v10 }
  0x17 PF: > { %s13_s11 = sadd.s32 1, %s225_s11  }
  0x18   : > { %p10_p4 = scmp.ge.s32.totalorder %s13_s11, 6  }
  0x1a   :  { %12 = sbr.rel (!%p10_p4) target bundleno = 2 (0x2), region = 56 }

</bundles_post_ra>
